<compile_context>
chip_gen: v7x
topology: tpu7x:2x2x1
jax: 0.10.0
libtpu: 0.0.40
codegen_flags: <defaults>
</compile_context>

<pallas_src>
import math
import functools

import jax
import jax.numpy as jnp
from jax.experimental import pallas as pl
from jax.experimental.pallas import tpu as pltpu


def _gcn_kernel(x_ref, adj_ref, wt_ref, o_ref, *, inv_sqrt_fin, mxu_dtype):
    # x_ref:   (TB, N, F_in)   tile of fused batch*time slices
    # adj_ref: (N, N)          sym-normalized adjacency (same block every step)
    # wt_ref:  (F_in, F_out)   Theta weight, already transposed (W^T)
    # o_ref:   (TB, N, F_out)  output tile (full trailing dims -> one dense store)
    tb, n, f_in = x_ref.shape
    f_out = wt_ref.shape[1]

    xs_m = x_ref[...].astype(mxu_dtype)                     # (TB, N, F_in)
    wt = wt_ref[...].astype(mxu_dtype)                      # (F_in, F_out)

    # Scaled dot-product spatial attention, batched over TB.  The x @ x^T
    # transpose is absorbed into the contraction dims; bf16 MXU in, f32 acc.
    scores = jnp.einsum("bnf,bmf->bnm", xs_m, xs_m,
                        preferred_element_type=jnp.float32) * inv_sqrt_fin
    scores = scores - jnp.max(scores, axis=-1, keepdims=True)
    e = jnp.exp(scores)

    # Softmax denominator on the EUP (approx vrcp).  The module's trailing
    # 1/sqrt(F_in) is folded into this (TB, N, 1) factor instead of costing an
    # extra (TB, N, N) VPU multiply.
    inv = pl.reciprocal(jnp.sum(e, axis=-1, keepdims=True), approx=True)
    inv = inv * inv_sqrt_fin

    # Fused (Adj ⊙ softmax) chain: only ~2 (TB, N, N) f32 values stay live.
    c = (adj_ref[...][None, :, :] * e * inv).astype(mxu_dtype)

    # Graph convolution, batched: (TB,N,N) @ (TB,N,F_in) -> (TB,N,F_in), f32 acc.
    h = jnp.einsum("bnm,bmf->bnf", c, xs_m,
                   preferred_element_type=jnp.float32)

    # Fused Theta matmul across all TB*N rows (single MXU-filling matmul) + ReLU.
    y = jnp.dot(h.reshape(tb * n, f_in).astype(mxu_dtype), wt,
                preferred_element_type=jnp.float32)
    y = jnp.maximum(y, 0.0)                                  # (TB*N, F_out)

    # Single dense full-block store: the block covers the full (N, F_out)
    # trailing dims, so the HBM writeback is one contiguous DMA and there are
    # no per-vertex masked lane-strip stores / unrolled store loops.
    o_ref[...] = y.reshape(tb, n, f_out).astype(o_ref.dtype)


def _round_up(v, m):
    return -(-v // m) * m


def _vmem_bytes_estimate(tb, n, f_in, f_out):
    """Padding-aware VMEM footprint (bytes) for one grid step.

    Every array's last dim is rounded up to 128 lanes and its second-to-last
    dim up to 8 sublanes; the pipeline blocks (x, adj, W^T, out) are counted
    twice (double-buffering); bf16 temporaries are counted at 4 B/elem.
    Deliberately conservative.
    """
    LANE, SUB = 128, 8
    fin_l = _round_up(f_in, LANE)
    fout_l = _round_up(f_out, LANE)
    n_l = _round_up(n, LANE)
    n_s = _round_up(n, SUB)

    x_blk = tb * n_s * fin_l
    o_blk = tb * n_s * fout_l
    adj_blk = n_s * n_l
    w_blk = _round_up(f_in, SUB) * fout_l
    pipeline = 2 * (x_blk + adj_blk + w_blk + o_blk)      # double-buffered

    temps = (4 * tb * n_s * n_l                           # scores / exp / c + slack
             + 4 * tb * n_s * fin_l                       # x bf16, h, h2
             + 2 * tb * n_s * fout_l)                     # Theta result + store value
    return 4 * (pipeline + temps)


def _hw_config():
    """Generation-aware (vmem_limit_bytes, tile cap, keep >= 2 grid steps)."""
    try:
        kind = jax.devices()[0].device_kind.lower()
    except Exception:
        kind = ""
    if any(s in kind for s in ("v5 lite", "v5e", "v6", "trillium")):
        # v5e / v6e: 128 MiB physical VMEM, single TensorCore per chip
        # -> bigger scoped-VMEM limit, larger tiles, no >=2-step requirement.
        return 64 * 1024 * 1024, 1024, False
    # v7x (64 MiB per TC, 2 TCs) or unknown generation: stay conservative and
    # keep >= 2 grid steps so both TensorCores stream separate blocks.
    return 32 * 1024 * 1024, 256, True


def _pick_block_bt(bt, n, f_in, f_out, *, budget_bytes, cap, want_two_steps):
    """Largest tile of the fused batch*time axis that fits the VMEM budget.

    The x / out blocks cover the full (N, F) trailing dims, so any divisor of
    bt is a legal leading-block size; pick the biggest one under the cap whose
    padding-aware footprint fits, then (on 2-TC parts) keep >= 2 grid steps.
    """
    divisors = sorted((d for d in range(1, bt + 1) if bt % d == 0), reverse=True)
    fitting = [d for d in divisors
               if d <= cap and _vmem_bytes_estimate(d, n, f_in, f_out) <= budget_bytes]
    tb = fitting[0] if fitting else divisors[-1]
    if want_two_steps and bt // tb < 2:
        two = [d for d in (fitting if fitting else divisors) if bt // d >= 2]
        if two:
            tb = two[0]
    return tb


def spatial_attention_scaled_gcn(x, sym_norm_adj, theta_weight, *, use_bf16_mxu=True):
    """
    x:            (B, N, T, F_in)  float32
    sym_norm_adj: (N, N)           float32
    theta_weight: (F_out, F_in)    float32  (PyTorch nn.Linear weight layout)
    returns:      (B, N, T, F_out) float32
    """
    B, N, T, F_in = x.shape
    F_out = theta_weight.shape[0]
    BT = B * T

    # glue: permute to (B, T, N, F_in) and fuse batch*time (single XLA transpose).
    x_bt = jnp.transpose(x, (0, 2, 1, 3)).reshape(BT, N, F_in)
    wt = theta_weight.T                                     # (F_in, F_out), tiny

    vmem_limit, tb_cap, want_two_steps = _hw_config()
    tb = _pick_block_bt(BT, N, F_in, F_out,
                        budget_bytes=(vmem_limit * 7) // 10,
                        cap=tb_cap, want_two_steps=want_two_steps)

    kernel = functools.partial(
        _gcn_kernel,
        inv_sqrt_fin=1.0 / math.sqrt(F_in),
        mxu_dtype=jnp.bfloat16 if use_bf16_mxu else jnp.float32)

    out_flat = pl.pallas_call(
        kernel,
        out_shape=jax.ShapeDtypeStruct((BT, N, F_out), jnp.float32),
        grid=(BT // tb,),
        in_specs=[
            pl.BlockSpec((tb, N, F_in), lambda i: (i, 0, 0)),
            pl.BlockSpec((N, N), lambda i: (0, 0)),
            pl.BlockSpec((F_in, F_out), lambda i: (0, 0)),
        ],
        out_specs=pl.BlockSpec((tb, N, F_out), lambda i: (i, 0, 0)),
        compiler_params=pltpu.CompilerParams(
            dimension_semantics=("parallel",),
            vmem_limit_bytes=vmem_limit,
        ),
    )(x_bt, sym_norm_adj, wt)

    # glue: (B*T, N, F_out) -> (B, T, N, F_out) -> (B, N, T, F_out)
    return jnp.transpose(out_flat.reshape(B, T, N, F_out), (0, 2, 1, 3))


def _reference(x, sym_norm_adj, theta_weight):
    """Pure-JAX f32 reference mirroring the PyTorch forward exactly."""
    B, N, T, F_in = x.shape
    F_out = theta_weight.shape[0]
    xt = jnp.transpose(x, (0, 2, 1, 3)).reshape(B * T, N, F_in)
    score = jnp.einsum("bnf,bmf->bnm", xt, xt) / math.sqrt(F_in)
    att = jax.nn.softmax(score, axis=-1) / math.sqrt(F_in)
    h = jnp.einsum("bnm,bmf->bnf", sym_norm_adj[None] * att, xt)
    out = jax.nn.relu(jnp.einsum("bnf,of->bno", h, theta_weight))
    return jnp.transpose(out.reshape(B, T, N, F_out), (0, 2, 1, 3))


if __name__ == "__main__":
    # small shapes: batch=2, vertices=16, timesteps=8, in_channels=4, out_channels=8
    B, N, T, F_in, F_out = 2, 16, 8, 4, 8

    key = jax.random.PRNGKey(0)
    k_x, k_adj, k_w = jax.random.split(key, 3)

    x = jax.random.normal(k_x, (B, N, T, F_in), dtype=jnp.float32)

    # deterministic symmetric-normalized adjacency: D^{-1/2} (A + I) D^{-1/2}
    a_raw = (jax.random.uniform(k_adj, (N, N)) > 0.5).astype(jnp.float32)
    a_sym = jnp.maximum(a_raw, a_raw.T) + jnp.eye(N, dtype=jnp.float32)
    d_inv_sqrt = 1.0 / jnp.sqrt(jnp.sum(a_sym, axis=-1))
    sym_norm_adj = a_sym * d_inv_sqrt[:, None] * d_inv_sqrt[None, :]

    # deterministic Theta weight (nn.Linear(in_channels, out_channels, bias=False))
    theta_weight = jax.random.normal(k_w, (F_out, F_in), dtype=jnp.float32) * (
        1.0 / math.sqrt(F_in))

    out = spatial_attention_scaled_gcn(x, sym_norm_adj, theta_weight)
    out = jax.block_until_ready(out)

    ref = _reference(x, sym_norm_adj, theta_weight)
    assert out.shape == (B, N, T, F_out)
    # bf16 MXU operands + approx EUP reciprocal (applied per the perf review)
    # => compare against the pure-f32 reference with a correspondingly looser
    # tolerance (bf16 mantissa ~3 decimal digits).
    assert jnp.allclose(out, ref, atol=5e-2, rtol=5e-2), "mismatch vs reference"

    print("KERNEL_OK")
</pallas_src>

<mosaic_0001>
module attributes {stable_mosaic.version = 11 : i64} {
  func.func @_gcn_kernel(%arg0: i32, %arg1: memref<8x16x4xf32, #tpu.memory_space<vmem>>, %arg2: memref<16x16xf32, #tpu.memory_space<vmem>>, %arg3: memref<4x8xf32, #tpu.memory_space<vmem>>, %arg4: memref<8x16x8xf32, #tpu.memory_space<vmem>>) attributes {dimension_semantics = [#tpu.dimension_semantics<parallel>], iteration_bounds = array<i64: 2>, scalar_prefetch = 0 : i64, scratch_operands = 0 : i64, tpu.core_type = #tpu.core_type<tc>, window_params = [{transform_indices = @transform_0, window_bounds = array<i64: 8, 16, 4>}, {pipeline_mode = #tpu.pipeline_mode<synchronous>, transform_indices = @transform_1, window_bounds = array<i64: 16, 16>}, {pipeline_mode = #tpu.pipeline_mode<synchronous>, transform_indices = @transform_2, window_bounds = array<i64: 4, 8>}, {transform_indices = @transform_3, window_bounds = array<i64: 8, 16, 8>}]} {
    %c0 = arith.constant 0 : index
    %c0_0 = arith.constant 0 : index
    %c0_1 = arith.constant 0 : index
    %0 = vector.load %arg1[%c0, %c0_0, %c0_1] : memref<8x16x4xf32, #tpu.memory_space<vmem>>, vector<8x16x4xf32>
    %1 = arith.truncf %0 : vector<8x16x4xf32> to vector<8x16x4xbf16>
    %c0_2 = arith.constant 0 : index
    %c0_3 = arith.constant 0 : index
    %2 = vector.load %arg3[%c0_2, %c0_3] : memref<4x8xf32, #tpu.memory_space<vmem>>, vector<4x8xf32>
    %3 = arith.truncf %2 : vector<4x8xf32> to vector<4x8xbf16>
    "tpu.trace_start"() <{level = 10 : i32, message = "bnf,bmf->bnm"}> : () -> ()
    %cst = arith.constant dense<0.000000e+00> : vector<8x16x16xf32>
    %4 = tpu.matmul %1, %1, %cst {dimension_numbers = #tpu.dot_dimension_numbers<[2], [2], [1], [1], [0, 0, 0, 1, 1, 1], [0], [0]>} : vector<8x16x4xbf16>, vector<8x16x4xbf16>, vector<8x16x16xf32> -> vector<8x16x16xf32>
    "tpu.trace_stop"() : () -> ()
    %cst_4 = arith.constant 5.000000e-01 : f32
    %5 = vector.broadcast %cst_4 : f32 to vector<8x16x16xf32>
    %6 = arith.mulf %4, %5 : vector<8x16x16xf32>
    %cst_5 = arith.constant dense<0xFF800000> : vector<8x16xf32>
    %7 = vector.multi_reduction <maximumf>, %6, %cst_5 [2] : vector<8x16x16xf32> to vector<8x16xf32>
    %8 = vector.shape_cast %7 : vector<8x16xf32> to vector<8x16x1xf32>
    %9 = vector.broadcast %8 : vector<8x16x1xf32> to vector<8x16x16xf32>
    %10 = arith.subf %6, %9 : vector<8x16x16xf32>
    %11 = math.exp %10 : vector<8x16x16xf32>
    %cst_6 = arith.constant dense<0.000000e+00> : vector<8x16xf32>
    %12 = vector.multi_reduction <add>, %11, %cst_6 [2] : vector<8x16x16xf32> to vector<8x16xf32>
    %13 = vector.shape_cast %12 : vector<8x16xf32> to vector<8x16x1xf32>
    %14 = tpu.reciprocal %13 {approx = true} : vector<8x16x1xf32> -> vector<8x16x1xf32>
    %cst_7 = arith.constant 5.000000e-01 : f32
    %15 = vector.broadcast %cst_7 : f32 to vector<8x16x1xf32>
    %16 = arith.mulf %14, %15 : vector<8x16x1xf32>
    %c0_8 = arith.constant 0 : index
    %c0_9 = arith.constant 0 : index
    %17 = vector.load %arg2[%c0_8, %c0_9] : memref<16x16xf32, #tpu.memory_space<vmem>>, vector<16x16xf32>
    %18 = vector.shape_cast %17 : vector<16x16xf32> to vector<1x16x16xf32>
    %19 = vector.broadcast %18 : vector<1x16x16xf32> to vector<8x16x16xf32>
    %20 = arith.mulf %19, %11 : vector<8x16x16xf32>
    %21 = vector.broadcast %16 : vector<8x16x1xf32> to vector<8x16x16xf32>
    %22 = arith.mulf %20, %21 : vector<8x16x16xf32>
    %23 = arith.truncf %22 : vector<8x16x16xf32> to vector<8x16x16xbf16>
    "tpu.trace_start"() <{level = 10 : i32, message = "bnm,bmf->bnf"}> : () -> ()
    %cst_10 = arith.constant dense<0.000000e+00> : vector<8x16x4xf32>
    %24 = tpu.matmul %23, %1, %cst_10 {dimension_numbers = #tpu.dot_dimension_numbers<[2], [1], [1], [2], [0, 0, 0, 1, 1, 2], [0], [0]>} : vector<8x16x16xbf16>, vector<8x16x4xbf16>, vector<8x16x4xf32> -> vector<8x16x4xf32>
    "tpu.trace_stop"() : () -> ()
    %25 = vector.shape_cast %24 : vector<8x16x4xf32> to vector<128x4xf32>
    %26 = arith.truncf %25 : vector<128x4xf32> to vector<128x4xbf16>
    %cst_11 = arith.constant dense<0.000000e+00> : vector<128x8xf32>
    %27 = tpu.matmul %26, %3, %cst_11 {dimension_numbers = #tpu.dot_dimension_numbers<[1], [0], [0], [1], [0, 0, 1, 1], [], []>} : vector<128x4xbf16>, vector<4x8xbf16>, vector<128x8xf32> -> vector<128x8xf32>
    %cst_12 = arith.constant 0.000000e+00 : f32
    %28 = vector.broadcast %cst_12 : f32 to vector<128x8xf32>
    %29 = arith.maximumf %27, %28 : vector<128x8xf32>
    %30 = vector.shape_cast %29 : vector<128x8xf32> to vector<8x16x8xf32>
    %c0_13 = arith.constant 0 : index
    %c0_14 = arith.constant 0 : index
    %c0_15 = arith.constant 0 : index
    %31 = vector.load %arg4[%c0_13, %c0_14, %c0_15] : memref<8x16x8xf32, #tpu.memory_space<vmem>>, vector<8x16x8xf32>
    tpu.vector_store %arg4[%c0_13, %c0_14, %c0_15], %30 {strides = array<i32>} : memref<8x16x8xf32, #tpu.memory_space<vmem>>, vector<8x16x8xf32>,
    return
  }
  func.func @transform_0(%arg0: i32) -> (i32, i32, i32) {
    %c0_i32 = arith.constant 0 : i32
    %c0_i32_0 = arith.constant 0 : i32
    %c0_i32_1 = arith.constant 0 : i32
    return %arg0, %c0_i32, %c0_i32_0 : i32, i32, i32
  }
  func.func @transform_1(%arg0: i32) -> (i32, i32) {
    %c0_i32 = arith.constant 0 : i32
    %c0_i32_0 = arith.constant 0 : i32
    %c0_i32_1 = arith.constant 0 : i32
    return %c0_i32, %c0_i32_0 : i32, i32
  }
  func.func @transform_2(%arg0: i32) -> (i32, i32) {
    %c0_i32 = arith.constant 0 : i32
    %c0_i32_0 = arith.constant 0 : i32
    %c0_i32_1 = arith.constant 0 : i32
    return %c0_i32, %c0_i32_0 : i32, i32
  }
  func.func @transform_3(%arg0: i32) -> (i32, i32, i32) {
    %c0_i32 = arith.constant 0 : i32
    %c0_i32_0 = arith.constant 0 : i32
    %c0_i32_1 = arith.constant 0 : i32
    return %arg0, %c0_i32, %c0_i32_0 : i32, i32, i32
  }
}

</mosaic_0001>

<bundles_post_ra>
// kernel: tpu_custom_call.1
= control target key start
LH: loop header
LB: loop body
LE: loop exit
PB: predicated region body
PF: predicated region fallthrough
CT: control target
= control target key end

     0   :  { %s1672_s12 = smov 0   ;;  %s2047_s0 = inlined_call_operand.vmem [shape: f32[16,16,4], index: 0, kind: input, shape index: {}]   ;;  %s2048_s1 = inlined_call_operand.vmem [shape: f32[16,16], index: 1, kind: input, shape index: {}]   ;;  %s2049_s2 = inlined_call_operand.vmem [shape: f32[4,8], index: 2, kind: input, shape index: {}]   ;;  %s2050_s3 = inlined_call_operand.vmem [shape: f32[16,16,8], index: 3, kind: output, shape index: {}]  }
   0x1 LB: > { %s1370_s13 = sadd.s32 4294967295, %s1648_s12   ;;  %p1374_p0 = scmp.ge.s32.totalorder %s1648_s12, 1  ;;  %s1648_s12 = sphi %s1672_s12, %s13_s12  }
   0x2   : > { %p139_p1 = scmp.lt.s32.totalorder %s1648_s12, 3 }
   0x4   : > { %p140_p2 = pnand %p1374_p0, %p139_p1 }
   0x5   : > { %s1375_s14 = sshll.u32 (!%p140_p2), %s1370_s13, 3  ;;  %v1650_v0 = vmov (!%p140_p2), 0.0   ;;  %vm1651_vm0 = vmmov (!%p140_p2), 0   ;;  %vm206_vm1 = vcmask (!%p140_p2), 31744   ;;  %vm575_vm2 = vcmask (!%p140_p2), 130048  }
   0x6   : > { %143 = sbr.rel (%p140_p2) target bundleno = 1026 (0x402), region = 32  ;;  %1450 = vmatprep.subr.bf16.mxu0 (!%p140_p2), %v1650_v0  ;;  %1456 = vmatprep.subr.bf16.mxu1 (!%p140_p2), %v1650_v0  ;;  %p166_p3 = scmp.lt.s32.totalorder (!%p140_p2), %s1375_s14, 15  ;;  %vm1178_vm3 = vcmask (!%p140_p2), 1041408   ;;  %vm1295_vm4 = vcmask (!%p140_p2), 64512  }
   0x7   : > { %1452 = vmatprep.mubr.msk.bf16.mxu0 (!%p140_p2), %vm1651_vm0, %v1650_v0  ;;  %1458 = vmatprep.mubr.msk.bf16.mxu1 (!%p140_p2), %vm1651_vm0, %v1650_v0 }
   0xd   : > { %s2052_s14 = smov (!%p166_p3, %s1375_s14), 15 }
   0xe   : > { %s1407_s15 = sshll.u32 %s2052_s14, 4 }
   0xf   : > { %s1694_s18 = scalar_lea.vmem %s2047_s0, %s1407_s15  ;;  %s2010_s27 = scalar_lea.vmem %s2050_s3, %s1407_s15 }
  0x10   : > { %v180_v1 = vld [vmem:[%s1694_s18] sm:$0xff]  ;;  %v181_v2 = vld [vmem:[%s1694_s18 + $0x8] sm:$0xff]  ;;  %v182_v3 = vld [vmem:[%s1694_s18 + $0x10] sm:$0xff] }
  0x11   : > { %v196_v4 = vpack.c.bf16 %v181_v2, %v180_v1  ;;  %v183_v5 = vld [vmem:[%s1694_s18 + $0x18] sm:$0xff]  ;;  %v184_v7 = vld [vmem:[%s1694_s18 + $0x20] sm:$0xff]  ;;  %v185_v8 = vld [vmem:[%s1694_s18 + $0x28] sm:$0xff] }
  0x12   : > { %v197_v6 = vpack.c.bf16 %v183_v5, %v182_v3  ;;  %v186_v10 = vld [vmem:[%s1694_s18 + $0x30] sm:$0xff]  ;;  %v187_v11 = vld [vmem:[%s1694_s18 + $0x38] sm:$0xff]  ;;  %v1707_v13 = vpack.c.bf16 %v185_v8, %v184_v7  ;;  %v188_v17 = vld [vmem:[%s1694_s18 + $0x40] sm:$0xff] }
  0x13   : > { %v208_v9 = vsel %vm206_vm1, %v196_v4, 0  ;;  %v1710_v14 = vpack.c.bf16 %v187_v11, %v186_v10  ;;  %v189_v18 = vld [vmem:[%s1694_s18 + $0x48] sm:$0xff]  ;;  %v190_v19 = vld [vmem:[%s1694_s18 + $0x50] sm:$0xff]  ;;  %v191_v20 = vld [vmem:[%s1694_s18 + $0x58] sm:$0xff] }
  0x14   : > { %1451 = vmatpush3.bf16.xpose.msra.mxu0 %v208_v9  ;;  %v252_v12 = vsel %vm206_vm1, %v197_v6, 0  ;;  %v296_v15 = vsel %vm206_vm1, %v1707_v13, 0  ;;  %v1724_v21 = vpack.c.bf16 %v189_v18, %v188_v17  ;;  %v1729_v22 = vpack.c.bf16 %v191_v20, %v190_v19  ;;  %v192_v25 = vld [vmem:[%s1694_s18 + $0x60] sm:$0xff]  ;;  %v193_v26 = vld [vmem:[%s1694_s18 + $0x68] sm:$0xff]  ;;  %v194_v27 = vld [vmem:[%s1694_s18 + $0x70] sm:$0xff] }
  0x15   : > { %1457 = vmatpush3.bf16.xpose.msra.mxu1 %v252_v12  ;;  %1462 = vmatprep.subr.bf16.mxu0 %v1650_v0  ;;  %v340_v16 = vsel %vm206_vm1, %v1710_v14, 0  ;;  %v195_v28 = vld [vmem:[%s1694_s18 + $0x78] sm:$0xff]  ;;  %v1746_v29 = vpack.c.bf16 %v193_v26, %v192_v25 }
  0x16   : > { %1468 = vmatprep.subr.bf16.mxu1 %v1650_v0  ;;  %v384_v23 = vsel %vm206_vm1, %v1724_v21, 0  ;;  %v428_v24 = vsel %vm206_vm1, %v1729_v22, 0  ;;  %v1751_v30 = vpack.c.bf16 %v195_v28, %v194_v27 }
  0x17   : > { %v472_v31 = vsel %vm206_vm1, %v1746_v29, 0 }
  0x18   : > { %v516_v32 = vsel %vm206_vm1, %v1751_v30, 0 }
  0x1b   : > { %1453 = vmatmul.mubr.msk.bf16.vlgmr.msra.gmra.mrb[0].mxu0 %vm206_vm1, %v196_v4 }
  0x1c   : > { %1459 = vmatmul.mubr.msk.bf16.vlgmr.msra.gmra.mrb[0].mxu1 %vm206_vm1, %v197_v6  ;;  %1463 = vmatpush3.bf16.xpose.msra.mxu0 %v296_v15 }
  0x1d   : > { %1469 = vmatpush3.bf16.xpose.msra.mxu1 %v340_v16  ;;  %1464 = vmatprep.mubr.msk.bf16.mxu0 %vm1651_vm0, %v1650_v0 }
  0x1e   : > { %1474 = vmatprep.subr.bf16.mxu0 %v1650_v0  ;;  %1470 = vmatprep.mubr.msk.bf16.mxu1 %vm1651_vm0, %v1650_v0 }
  0x1f   : > { %1480 = vmatprep.subr.bf16.mxu1 %v1650_v0 }
  0x23   : > { %1465 = vmatmul.mubr.msk.bf16.vlgmr.msra.gmra.mrb[4].mxu0 %vm206_vm1, %v1707_v13 }
  0x24   : > { %1475 = vmatpush3.bf16.xpose.msra.mxu0 %v384_v23  ;;  %1471 = vmatmul.mubr.msk.bf16.vlgmr.msra.gmra.mrb[4].mxu1 %vm206_vm1, %v1710_v14 }
  0x25   : > { %1481 = vmatpush3.bf16.xpose.msra.mxu1 %v428_v24  ;;  %1476 = vmatprep.mubr.msk.bf16.mxu0 %vm1651_vm0, %v1650_v0 }
  0x26   : > { %1486 = vmatprep.subr.bf16.mxu0 %v1650_v0  ;;  %1482 = vmatprep.mubr.msk.bf16.mxu1 %vm1651_vm0, %v1650_v0 }
  0x27   : > { %1492 = vmatprep.subr.bf16.mxu1 %v1650_v0 }
  0x2b   : > { %1477 = vmatmul.mubr.msk.bf16.vlgmr.msra.gmra.mrb[8].mxu0 %vm206_vm1, %v1724_v21 }
  0x2c   : > { %1487 = vmatpush3.bf16.xpose.msra.mxu0 %v472_v31  ;;  %1483 = vmatmul.mubr.msk.bf16.vlgmr.msra.gmra.mrb[8].mxu1 %vm206_vm1, %v1729_v22 }
  0x2d   : > { %1493 = vmatpush3.bf16.xpose.msra.mxu1 %v516_v32  ;;  %1488 = vmatprep.mubr.msk.bf16.mxu0 %vm1651_vm0, %v1650_v0 }
  0x2e   : > { %1494 = vmatprep.mubr.msk.bf16.mxu1 %vm1651_vm0, %v1650_v0  ;;  %1498 = vmatprep.subr.bf16.mxu0 %v1650_v0 }
  0x2f   : > { %1504 = vmatprep.subr.bf16.mxu1 %v1650_v0 }
  0x33   : > { %1489 = vmatmul.mubr.msk.bf16.vlgmr.msra.gmra.mrb[12].mxu0 %vm206_vm1, %v1746_v29 }
  0x34   : > { %1495 = vmatmul.mubr.msk.bf16.vlgmr.msra.gmra.mrb[12].mxu1 %vm206_vm1, %v1751_v30  ;;  %1499 = vmatpush3.bf16.msra.mxu0 %v196_v4 }
  0x35   : > { %1505 = vmatpush3.bf16.msra.mxu1 %v197_v6  ;;  %1500 = vmatprep.mubr.msk.bf16.mxu0 %vm1651_vm0, %v1650_v0 }
  0x36   : > { %1510 = vmatprep.subr.bf16.mxu0 %v1650_v0  ;;  %1506 = vmatprep.mubr.msk.bf16.mxu1 %vm1651_vm0, %v1650_v0 }
  0x37   : > { %1516 = vmatprep.subr.bf16.mxu1 %v1650_v0 }
  0xee   : > { %v244_v33 = vpop.f32.mrb[0].mxu0 }
  0xef   : > { %v1778_v34 = vmul.f32 0.5, %v244_v33  ;;  %v288_v35 = vpop.f32.mrb[0].mxu1  ;;  %v1454_v36 = vpop.f32.mrb[1].mxu0 }
  0xf0   : > { %v1780_v37 = vmul.f32 0.5, %v288_v35  ;;  %v247_v38 = vpop.f32.mrb[2].mxu0  ;;  %v1460_v39 = vpop.f32.mrb[1].mxu1 }
  0xf1   : > { %v1782_v40 = vmul.f32 0.5, %v247_v38  ;;  %v1455_v41 = vpop.f32.mrb[3].mxu0  ;;  %v291_v42 = vpop.f32.mrb[2].mxu1  ;;  %v576_v43 = vsel %vm575_vm2, %v1778_v34, -inf }
  0xf2   : > { %v1786_v44 = vmul.f32 0.5, %v291_v42  ;;  %v582_v45 = vsel %vm575_vm2, %v1780_v37, -inf  ;;  %v1461_v46 = vpop.f32.mrb[3].mxu1  ;;  %577 = vmax.xlane.f32.xlu0 %v576_v43 }
  0xf3   : > { %583 = vmax.xlane.f32.xlu1 %v582_v45  ;;  %v579_v48 = vsel %vm575_vm2, %v1782_v40, -inf }
  0xf4   : > { %v585_v47 = vsel %vm575_vm2, %v1786_v44, -inf }
  0xf6   : > { %580 = vmax.xlane.f32.xlu0 %v579_v48  ;;  %v332_v49 = vpop.f32.mrb[4].mxu0 }
  0xf7   : > { %586 = vmax.xlane.f32.xlu1 %v585_v47  ;;  %v1794_v50 = vmul.f32 0.5, %v332_v49  ;;  %v1466_v51 = vpop.f32.mrb[5].mxu0  ;;  %v376_v52 = vpop.f32.mrb[4].mxu1 }
  0xf8   : > { %v335_v53 = vpop.f32.mrb[6].mxu0  ;;  %v1796_v54 = vmul.f32 0.5, %v376_v52  ;;  %v1472_v55 = vpop.f32.mrb[5].mxu1 }
  0xf9   : > { %v1798_v56 = vmul.f32 0.5, %v335_v53  ;;  %v1467_v57 = vpop.f32.mrb[7].mxu0  ;;  %v588_v58 = vsel %vm575_vm2, %v1794_v50, -inf  ;;  %v379_v59 = vpop.f32.mrb[6].mxu1 }
  0xfa   : > { %589 = vmax.xlane.f32.xlu0 %v588_v58  ;;  %v1802_v60 = vmul.f32 0.5, %v379_v59  ;;  %v1473_v61 = vpop.f32.mrb[7].mxu1  ;;  %v594_v63 = vsel %vm575_vm2, %v1796_v54, -inf }
  0xfb   : > { %v591_v62 = vsel %vm575_vm2, %v1798_v56, -inf }
  0xfc   : > { %592 = vmax.xlane.f32.xlu1 %v591_v62  ;;  %v597_v1 = vsel %vm575_vm2, %v1802_v60, -inf }
  0xfe   : > { %595 = vmax.xlane.f32.xlu0 %v594_v63  ;;  %v420_v2 = vpop.f32.mrb[8].mxu0 }
  0xff   : > { %v1810_v3 = vmul.f32 0.5, %v420_v2  ;;  %v1478_v4 = vpop.f32.mrb[9].mxu0  ;;  %v464_v5 = vpop.f32.mrb[8].mxu1 }
 0x100   : > { %598 = vmax.xlane.f32.xlu1 %v597_v1  ;;  %v423_v6 = vpop.f32.mrb[10].mxu0  ;;  %v1812_v7 = vmul.f32 0.5, %v464_v5  ;;  %v1484_v8 = vpop.f32.mrb[9].mxu1 }
 0x101   : > { %v1814_v9 = vmul.f32 0.5, %v423_v6  ;;  %v1479_v10 = vpop.f32.mrb[11].mxu0  ;;  %v600_v11 = vsel %vm575_vm2, %v1810_v3, -inf  ;;  %v467_v12 = vpop.f32.mrb[10].mxu1 }
 0x102   : > { %601 = vmax.xlane.f32.xlu0 %v600_v11  ;;  %v1818_v15 = vmul.f32 0.5, %v467_v12  ;;  %v1485_v16 = vpop.f32.mrb[11].mxu1  ;;  %v606_v18 = vsel %vm575_vm2, %v1812_v7, -inf }
 0x103   : > { %v603_v17 = vsel %vm575_vm2, %v1814_v9, -inf }
 0x104   : > { %604 = vmax.xlane.f32.xlu1 %v603_v17  ;;  %v609_v19 = vsel %vm575_vm2, %v1818_v15, -inf }
 0x106   : > { %607 = vmax.xlane.f32.xlu0 %v606_v18  ;;  %v508_v20 = vpop.f32.mrb[12].mxu0 }
 0x107   : > { %v1826_v23 = vmul.f32 0.5, %v508_v20  ;;  %v1490_v24 = vpop.f32.mrb[13].mxu0  ;;  %v552_v25 = vpop.f32.mrb[12].mxu1 }
 0x108   : > { %610 = vmax.xlane.f32.xlu1 %v609_v19  ;;  %v511_v26 = vpop.f32.mrb[14].mxu0  ;;  %v1828_v27 = vmul.f32 0.5, %v552_v25  ;;  %v1496_v28 = vpop.f32.mrb[13].mxu1 }
 0x109   : > { %v1830_v31 = vmul.f32 0.5, %v511_v26  ;;  %v1491_v32 = vpop.f32.mrb[15].mxu0  ;;  %v612_v33 = vsel %vm575_vm2, %v1826_v23, -inf  ;;  %v555_v35 = vpop.f32.mrb[14].mxu1 }
 0x10a   : > { %613 = vmax.xlane.f32.xlu0 %v612_v33  ;;  %v1834_v36 = vmul.f32 0.5, %v555_v35  ;;  %v1497_v38 = vpop.f32.mrb[15].mxu1  ;;  %v618_v41 = vsel %vm575_vm2, %v1828_v27, -inf }
 0x10b   : > { %v615_v39 = vsel %vm575_vm2, %v1830_v31, -inf }
 0x10c   : > { %616 = vmax.xlane.f32.xlu1 %v615_v39  ;;  %v621_v42 = vsel %vm575_vm2, %v1834_v36, -inf }
 0x10e   : > { %619 = vmax.xlane.f32.xlu0 %v618_v41 }
 0x110   : > { %622 = vmax.xlane.f32.xlu1 %v621_v42 }
 0x17f   : > { %v578_v43 = vpop.xlane.xlu0 %577 }
 0x180   : > { %v584_v45 = vpop.xlane.xlu1 %583  ;;  %v624_v46 = vsub.f32 %v1778_v34, %v578_v43 }
 0x181   : > { %v626_v47 = vsub.f32 %v1780_v37, %v584_v45 }
 0x182   : > { %v640_v48 = vmul.f32 1.442695, %v624_v46 }
 0x183   : > { %v644_v49 = vmul.f32 1.442695, %v626_v47  ;;  %v581_v51 = vpop.xlane.xlu0 %580 }
 0x184   : > { %1578 = vpow2.f32 %v640_v48  ;;  %v587_v52 = vpop.xlane.xlu1 %586  ;;  %v625_v53 = vsub.f32 %v1782_v40, %v581_v51 }
 0x185   : > { %v627_v55 = vsub.f32 %v1786_v44, %v587_v52  ;;  %1580 = vpow2.f32 %v644_v49 }
 0x186   : > { %v642_v57 = vmul.f32 1.442695, %v625_v53 }
 0x187   : > { %v646_v58 = vmul.f32 1.442695, %v627_v55  ;;  %v590_v59 = vpop.xlane.xlu0 %589 }
 0x188   : > { %1582 = vpow2.f32 %v642_v57  ;;  %v628_v61 = vsub.f32 %v1794_v50, %v590_v59 }
 0x189   : > { %v593_v62 = vpop.xlane.xlu1 %592  ;;  %1584 = vpow2.f32 %v646_v58 }
 0x18a   : > { %v648_v34 = vmul.f32 1.442695, %v628_v61  ;;  %v629_v37 = vsub.f32 %v1798_v56, %v593_v62 }
 0x18b   : > { %v596_v63 = vpop.xlane.xlu0 %595 }
 0x18c   : > { %1586 = vpow2.f32 %v648_v34  ;;  %v650_v1 = vmul.f32 1.442695, %v629_v37  ;;  %v630_v2 = vsub.f32 %v1796_v54, %v596_v63 }
 0x18d   : > { %v599_v40 = vpop.xlane.xlu1 %598 }
 0x18e   : > { %v1849_v4 = vpop.eup %1578  ;;  %1588 = vpow2.f32 %v650_v1  ;;  %v652_v44 = vmul.f32 1.442695, %v630_v2  ;;  %v631_v5 = vsub.f32 %v1802_v60, %v599_v40 }
 0x18f   : > { %v602_v6 = vpop.xlane.xlu0 %601  ;;  %v672_v50 = vsel %vm575_vm2, %v1849_v4, 0.0  ;;  %v1854_v8 = vpop.eup %1580 }
 0x190   : > { %1590 = vpow2.f32 %v652_v44  ;;  %v654_v56 = vmul.f32 1.442695, %v631_v5  ;;  %v632_v10 = vsub.f32 %v1810_v3, %v602_v6  ;;  %673 = vadd.xlane.f32.xlu0 %v672_v50  ;;  %v678_v60 = vsel %vm575_vm2, %v1854_v8, 0.0 }
 0x191   : > { %v605_v11 = vpop.xlane.xlu1 %604 }
 0x192   : > { %v1857_v54 = vpop.eup %1582  ;;  %1592 = vpow2.f32 %v654_v56  ;;  %v656_v12 = vmul.f32 1.442695, %v632_v10  ;;  %v633_v16 = vsub.f32 %v1814_v9, %v605_v11 }
 0x193   : > { %v608_v17 = vpop.xlane.xlu0 %607  ;;  %v675_v18 = vsel %vm575_vm2, %v1857_v54, 0.0  ;;  %v1864_v19 = vpop.eup %1584 }
 0x194   : > { %1594 = vpow2.f32 %v656_v12  ;;  %v658_v20 = vmul.f32 1.442695, %v633_v16  ;;  %v634_v3 = vsub.f32 %v1812_v7, %v608_v17  ;;  %679 = vadd.xlane.f32.xlu0 %v678_v60  ;;  %676 = vadd.xlane.f32.xlu1 %v675_v18  ;;  %v681_v33 = vsel %vm575_vm2, %v1864_v19, 0.0  ;;  %v1925_v60 = vld [vmem:[%s2048_s1] sm:$0xff]  ;;  %v1930_v18 = vld [vmem:[%s2048_s1 + $0x8] sm:$0xff] }
 0x195   : > { %v611_v24 = vpop.xlane.xlu1 %610 }
 0x196   : > { %v1867_v25 = vpop.eup %1586  ;;  %1596 = vpow2.f32 %v658_v20  ;;  %v660_v9 = vmul.f32 1.442695, %v634_v3  ;;  %v635_v26 = vsub.f32 %v1818_v15, %v611_v24 }
 0x197   : > { %v614_v28 = vpop.xlane.xlu0 %613  ;;  %v684_v32 = vsel %vm575_vm2, %v1867_v25, 0.0 }
 0x198   : > { %v1874_v35 = vpop.eup %1588  ;;  %1598 = vpow2.f32 %v660_v9  ;;  %v662_v7 = vmul.f32 1.442695, %v635_v26  ;;  %v636_v38 = vsub.f32 %v1826_v23, %v614_v28  ;;  %685 = vadd.xlane.f32.xlu0 %v684_v32  ;;  %682 = vadd.xlane.f32.xlu1 %v681_v33  ;;  %v754_v28 = vmul.f32 %v1849_v4, %v1925_v60 }
 0x199   : > { %v617_v39 = vpop.xlane.xlu1 %616  ;;  %v687_v46 = vsel %vm575_vm2, %v1874_v35, 0.0  ;;  %v755_v32 = vmul.f32 %v1857_v54, %v1930_v18  ;;  %v757_v4 = vmul.f32 %v1864_v19, %v1930_v18 }
 0x19a   : > { %v1877_v41 = vpop.eup %1590  ;;  %1600 = vpow2.f32 %v662_v7  ;;  %v664_v15 = vmul.f32 1.442695, %v636_v38  ;;  %v637_v42 = vsub.f32 %v1830_v31, %v617_v39 }
 0x19b   : > { %v620_v43 = vpop.xlane.xlu0 %619  ;;  %v690_v45 = vsel %vm575_vm2, %v1877_v41, 0.0 }
 0x19c   : > { %v1884_v47 = vpop.eup %1592  ;;  %1602 = vpow2.f32 %v664_v15  ;;  %v666_v23 = vmul.f32 1.442695, %v637_v42  ;;  %v638_v48 = vsub.f32 %v1828_v27, %v620_v43  ;;  %691 = vadd.xlane.f32.xlu0 %v690_v45  ;;  %688 = vadd.xlane.f32.xlu1 %v687_v46  ;;  %v756_v43 = vmul.f32 %v1854_v8, %v1925_v60 }
 0x19d   : > { %v623_v49 = vpop.xlane.xlu1 %622  ;;  %v693_v55 = vsel %vm575_vm2, %v1884_v47, 0.0 }
 0x19e   : > { %v1887_v51 = vpop.eup %1594  ;;  %1604 = vpow2.f32 %v666_v23  ;;  %v668_v31 = vmul.f32 1.442695, %v638_v48  ;;  %v639_v52 = vsub.f32 %v1834_v36, %v623_v49 }
 0x19f   : > { %v696_v53 = vsel %vm575_vm2, %v1887_v51, 0.0 }
 0x1a0   : > { %v1894_v57 = vpop.eup %1596  ;;  %1606 = vpow2.f32 %v668_v31  ;;  %v670_v58 = vmul.f32 1.442695, %v639_v52  ;;  %697 = vadd.xlane.f32.xlu0 %v696_v53  ;;  %694 = vadd.xlane.f32.xlu1 %v693_v55  ;;  %v758_v55 = vmul.f32 %v1867_v25, %v1925_v60 }
 0x1a1   : > { %v699_v36 = vsel %vm575_vm2, %v1894_v57, 0.0 }
 0x1a2   : > { %v1896_v27 = vpop.eup %1598  ;;  %1608 = vpow2.f32 %v670_v58 }
 0x1a3   : > { %v702_v59 = vsel %vm575_vm2, %v1896_v27, 0.0 }
 0x1a4   : > { %v1902_v61 = vpop.eup %1600  ;;  %703 = vadd.xlane.f32.xlu0 %v702_v59  ;;  %700 = vadd.xlane.f32.xlu1 %v699_v36  ;;  %v759_v59 = vmul.f32 %v1874_v35, %v1930_v18 }
 0x1a5   : > { %v705_v37 = vsel %vm575_vm2, %v1902_v61, 0.0 }
 0x1a6   : > { %v1904_v62 = vpop.eup %1602 }
 0x1a7   : > { %v708_v34 = vsel %vm575_vm2, %v1904_v62, 0.0 }
 0x1a8   : > { %v1910_v63 = vpop.eup %1604  ;;  %709 = vadd.xlane.f32.xlu0 %v708_v34  ;;  %706 = vadd.xlane.f32.xlu1 %v705_v37 }
 0x1a9   : > { %v711_v40 = vsel %vm575_vm2, %v1910_v63, 0.0 }
 0x1aa   : > { %v1912_v1 = vpop.eup %1606 }
 0x1ab   : > { %v714_v2 = vsel %vm575_vm2, %v1912_v1, 0.0 }
 0x1ac   : > { %v1918_v44 = vpop.eup %1608  ;;  %715 = vadd.xlane.f32.xlu0 %v714_v2  ;;  %712 = vadd.xlane.f32.xlu1 %v711_v40 }
 0x1ad   : > { %v717_v5 = vsel %vm575_vm2, %v1918_v44, 0.0 }
 0x1b0   : > { %718 = vadd.xlane.f32.xlu1 %v717_v5 }
 0x21d   : > { %v674_v6 = vpop.xlane.xlu0 %673 }
 0x21e   : > { %1610 = vrcp.f32 %v674_v6 }
 0x221   : > { %v680_v50 = vpop.xlane.xlu0 %679  ;;  %v677_v56 = vpop.xlane.xlu1 %676 }
 0x222   : > { %1612 = vrcp.f32 %v680_v50  ;;  %v761_v50 = vmul.f32 %v1884_v47, %v1930_v18 }
 0x223   : > { %1614 = vrcp.f32 %v677_v56 }
 0x225   : > { %v686_v10 = vpop.xlane.xlu0 %685  ;;  %v683_v11 = vpop.xlane.xlu1 %682 }
 0x226   : > { %1616 = vrcp.f32 %v686_v10 }
 0x227   : > { %1618 = vrcp.f32 %v683_v11 }
 0x228   : > { %v1611_v12 = vpop.eup %1610 }
 0x229   : > { %v692_v16 = vpop.xlane.xlu0 %691  ;;  %v689_v17 = vpop.xlane.xlu1 %688  ;;  %v736_v3 = vmul.f32 0.5, %v1611_v12 }
 0x22a   : > { %1620 = vrcp.f32 %v692_v16  ;;  %v762_v16 = vmul.f32 %v1887_v51, %v1925_v60 }
 0x22b   : > { %1622 = vrcp.f32 %v689_v17  ;;  %v770_v38 = vmul.f32 %v754_v28, %v736_v3 }
 0x22c   : > { %v1613_v20 = vpop.eup %1612 }
 0x22d   : > { %v1615_v24 = vpop.eup %1614  ;;  %v698_v9 = vpop.xlane.xlu0 %697  ;;  %v738_v39 = vmul.f32 0.5, %v1613_v20  ;;  %v763_v20 = vmul.f32 %v1894_v57, %v1930_v18 }
 0x22e   : > { %v695_v26 = vpop.xlane.xlu1 %694  ;;  %v737_v33 = vmul.f32 0.5, %v1615_v24  ;;  %1624 = vrcp.f32 %v698_v9 }
 0x22f   : > { %1626 = vrcp.f32 %v695_v26  ;;  %v772_v49 = vmul.f32 %v756_v43, %v738_v39 }
 0x230   : > { %v1617_v7 = vpop.eup %1616  ;;  %v771_v15 = vmul.f32 %v755_v32, %v737_v33  ;;  %v765_v32 = vmul.f32 %v1902_v61, %v1930_v18  ;;  %v767_v61 = vmul.f32 %v1910_v63, %v1930_v18 }
 0x231   : > { %v1619_v42 = vpop.eup %1618  ;;  %v704_v45 = vpop.xlane.xlu0 %703  ;;  %v740_v31 = vmul.f32 0.5, %v1617_v7 }
 0x232   : > { %v701_v46 = vpop.xlane.xlu1 %700  ;;  %v786_v23 = vpack.c.bf16 %v771_v15, %v770_v38  ;;  %v739_v48 = vmul.f32 0.5, %v1619_v42  ;;  %1628 = vrcp.f32 %v704_v45 }
 0x233   : > { %1630 = vrcp.f32 %v701_v46  ;;  %v774_v37 = vmul.f32 %v758_v55, %v740_v31 }
 0x234   : > { %v1621_v54 = vpop.eup %1620  ;;  %v773_v52 = vmul.f32 %v757_v4, %v739_v48  ;;  %1501 = vmatmul.mubr.msk.bf16.vlgmr.msra.gmra.mrb[16].mxu0 %vm575_vm2, %v786_v23  ;;  %v769_v48 = vmul.f32 %v1918_v44, %v1930_v18 }
 0x235   : > { %v1623_v53 = vpop.eup %1622  ;;  %v710_v8 = vpop.xlane.xlu0 %709  ;;  %1511 = vmatpush3.bf16.msra.mxu0 %v1707_v13  ;;  %1512 = vmatprep.mubr.msk.bf16.mxu0 %vm1651_vm0, %v1650_v0  ;;  %v742_v2 = vmul.f32 0.5, %v1621_v54  ;;  %v760_v13 = vmul.f32 %v1877_v41, %v1925_v60 }
 0x236   : > { %v707_v58 = vpop.xlane.xlu1 %706  ;;  %v787_v19 = vpack.c.bf16 %v773_v52, %v772_v49  ;;  %v741_v36 = vmul.f32 0.5, %v1623_v53  ;;  %1632 = vrcp.f32 %v710_v8  ;;  %1522 = vmatprep.subr.bf16.mxu0 %v1650_v0 }
 0x237   : > { %1634 = vrcp.f32 %v707_v58  ;;  %v776_v11 = vmul.f32 %v760_v13, %v742_v2 }
 0x238   : > { %v1625_v34 = vpop.eup %1624  ;;  %v775_v25 = vmul.f32 %v759_v59, %v741_v36  ;;  %1507 = vmatmul.mubr.msk.bf16.vlgmr.msra.gmra.mrb[16].mxu1 %vm575_vm2, %v787_v19 }
 0x239   : > { %v1627_v40 = vpop.eup %1626  ;;  %1517 = vmatpush3.bf16.msra.mxu1 %v1710_v14  ;;  %v716_v5 = vpop.xlane.xlu0 %715  ;;  %1518 = vmatprep.mubr.msk.bf16.mxu1 %vm1651_vm0, %v1650_v0  ;;  %v744_v12 = vmul.f32 0.5, %v1625_v34 }
 0x23a   : > { %v713_v6 = vpop.xlane.xlu1 %712  ;;  %v788_v35 = vpack.c.bf16 %v775_v25, %v774_v37  ;;  %v743_v56 = vmul.f32 0.5, %v1627_v40  ;;  %1636 = vrcp.f32 %v716_v5  ;;  %1528 = vmatprep.subr.bf16.mxu1 %v1650_v0 }
 0x23b   : > { %1638 = vrcp.f32 %v713_v6  ;;  %v778_v9 = vmul.f32 %v762_v16, %v744_v12 }
 0x23c   : > { %v1629_v10 = vpop.eup %1628  ;;  %v777_v41 = vmul.f32 %v761_v50, %v743_v56  ;;  %1513 = vmatmul.mubr.msk.bf16.vlgmr.msra.gmra.mrb[20].mxu0 %vm575_vm2, %v788_v35 }
 0x23d   : > { %v1631_v14 = vpop.eup %1630  ;;  %1523 = vmatpush3.bf16.msra.mxu0 %v1724_v21  ;;  %1524 = vmatprep.mubr.msk.bf16.mxu0 %vm1651_vm0, %v1650_v0  ;;  %v746_v26 = vmul.f32 0.5, %v1629_v10  ;;  %v764_v21 = vmul.f32 %v1896_v27, %v1925_v60  ;;  %v766_v27 = vmul.f32 %v1904_v62, %v1925_v60 }
 0x23e   : > { %v719_v17 = vpop.xlane.xlu1 %718  ;;  %v789_v47 = vpack.c.bf16 %v777_v41, %v776_v11  ;;  %v745_v3 = vmul.f32 0.5, %v1631_v14  ;;  %1534 = vmatprep.subr.bf16.mxu0 %v1650_v0 }
 0x23f   : > { %1640 = vrcp.f32 %v719_v17  ;;  %v780_v38 = vmul.f32 %v764_v21, %v746_v26 }
 0x240   : > { %v1633_v24 = vpop.eup %1632  ;;  %v779_v28 = vmul.f32 %v763_v20, %v745_v3  ;;  %1519 = vmatmul.mubr.msk.bf16.vlgmr.msra.gmra.mrb[20].mxu1 %vm575_vm2, %v789_v47 }
 0x241   : > { %v1635_v51 = vpop.eup %1634  ;;  %1529 = vmatpush3.bf16.msra.mxu1 %v1729_v22  ;;  %1530 = vmatprep.mubr.msk.bf16.mxu1 %vm1651_vm0, %v1650_v0  ;;  %v748_v39 = vmul.f32 0.5, %v1633_v24 }
 0x242   : > { %v790_v57 = vpack.c.bf16 %v779_v28, %v778_v9  ;;  %v747_v33 = vmul.f32 0.5, %v1635_v51  ;;  %1540 = vmatprep.subr.bf16.mxu1 %v1650_v0 }
 0x243   : > { %v782_v23 = vmul.f32 %v766_v27, %v748_v39 }
 0x244   : > { %v1637_v7 = vpop.eup %1636  ;;  %v781_v15 = vmul.f32 %v765_v32, %v747_v33  ;;  %1525 = vmatmul.mubr.msk.bf16.vlgmr.msra.gmra.mrb[24].mxu0 %vm575_vm2, %v790_v57 }
 0x245   : > { %v1639_v22 = vpop.eup %1638  ;;  %1535 = vmatpush3.bf16.msra.mxu0 %v1746_v29  ;;  %1536 = vmatprep.mubr.msk.bf16.mxu0 %vm1651_vm0, %v1650_v0  ;;  %v750_v45 = vmul.f32 0.5, %v1637_v7  ;;  %v768_v29 = vmul.f32 %v1912_v1, %v1925_v60  ;;  %v204_v1 = vld [vmem:[%s2049_s2] sm:$0xf] }
 0x246   : > { %v791_v42 = vpack.c.bf16 %v781_v15, %v780_v38  ;;  %v749_v43 = vmul.f32 0.5, %v1639_v22  ;;  %v205_v60 = vpack.c.bf16 %v204_v1, %v204_v1 }
 0x247   : > { %v784_v63 = vmul.f32 %v768_v29, %v750_v45 }
 0x248   : > { %v783_v4 = vmul.f32 %v767_v61, %v749_v43  ;;  %1531 = vmatmul.mubr.msk.bf16.vlgmr.msra.gmra.mrb[24].mxu1 %vm575_vm2, %v791_v42  ;;  %1566 = vmatprep.subr.msk.bf16.mxu0 %vm1178_vm3, %v205_v60  ;;  %v1180_v44 = vsel %vm1178_vm3, %v205_v60, 0 }
 0x249   : > { %v1641_v46 = vpop.eup %1640  ;;  %1541 = vmatpush3.bf16.msra.mxu1 %v1751_v30  ;;  %1542 = vmatprep.mubr.msk.bf16.mxu1 %vm1651_vm0, %v1650_v0 }
 0x24a   : > { %v751_v54 = vmul.f32 0.5, %v1641_v46  ;;  %v792_v62 = vpack.c.bf16 %v783_v4, %v782_v23  ;;  %1567 = vmatprep.subr.msk.bf16.mxu1 %vm1178_vm3, %v205_v60 }
 0x24c   : > { %v785_v49 = vmul.f32 %v769_v48, %v751_v54  ;;  %1537 = vmatmul.mubr.msk.bf16.vlgmr.msra.gmra.mrb[28].mxu0 %vm575_vm2, %v792_v62 }
 0x24d   : > { %1547 = vmatpush3.bf16.msra.mxu0 %v1180_v44 }
 0x24e   : > { %v793_v31 = vpack.c.bf16 %v785_v49, %v784_v63 }
 0x250   : > { %1543 = vmatmul.mubr.msk.bf16.vlgmr.msra.gmra.mrb[28].mxu1 %vm575_vm2, %v793_v31 }
 0x251   : > { %1565 = vmatpush3.bf16.msra.mxu1 %v1180_v44 }
 0x307   : > { %v831_v0 = vpop.f32.mrb[16].mxu0 }
 0x308   : > { %v1502_v30 = vpop.f32.mrb[17].mxu0 }
 0x309   : > { %v834_v18 = vpop.f32.mrb[18].mxu0 }
 0x30a   : > { %v1146_v52 = vpack.c.bf16 %v834_v18, %v831_v0  ;;  %v1503_v53 = vpop.f32.mrb[19].mxu0 }
 0x30b   : > { %v875_v55 = vpop.f32.mrb[16].mxu1 }
 0x30c   : > { %v1508_v8 = vpop.f32.mrb[17].mxu1  ;;  %1548 = vmatprep.mubr.msk.bf16.mxu0 %vm206_vm1, %v1146_v52 }
 0x30d   : > { %v878_v58 = vpop.f32.mrb[18].mxu1 }
 0x30e   : > { %v1147_v19 = vpack.c.bf16 %v878_v58, %v875_v55  ;;  %v1509_v59 = vpop.f32.mrb[19].mxu1 }
 0x30f   : > { %v919_v36 = vpop.f32.mrb[20].mxu0 }
 0x310   : > { %v1514_v34 = vpop.f32.mrb[21].mxu0  ;;  %1549 = vmatmul.mubr.msk.bf16.vlgmr.msra.gmra.mrb[32].mxu0 %vm206_vm1, %v1147_v19 }
 0x311   : > { %v922_v37 = vpop.f32.mrb[22].mxu0 }
 0x312   : > { %v1148_v2 = vpack.c.bf16 %v922_v37, %v919_v36  ;;  %v1515_v25 = vpop.f32.mrb[23].mxu0 }
 0x313   : > { %v963_v40 = vpop.f32.mrb[20].mxu1 }
 0x314   : > { %v1520_v13 = vpop.f32.mrb[21].mxu1  ;;  %1552 = vmatprep.mubr.msk.bf16.mxu0 %vm206_vm1, %v1148_v2 }
 0x315   : > { %v966_v5 = vpop.f32.mrb[22].mxu1 }
 0x316   : > { %v1149_v6 = vpack.c.bf16 %v966_v5, %v963_v40  ;;  %v1521_v35 = vpop.f32.mrb[23].mxu1 }
 0x317   : > { %v1007_v50 = vpop.f32.mrb[24].mxu0 }
 0x318   : > { %v1526_v56 = vpop.f32.mrb[25].mxu0  ;;  %1553 = vmatmul.mubr.msk.bf16.gmra.mrb[36].mxu0 %vm206_vm1, %v1149_v6 }
 0x319   : > { %v1010_v10 = vpop.f32.mrb[26].mxu0 }
 0x31a   : > { %v1150_v11 = vpack.c.bf16 %v1010_v10, %v1007_v50  ;;  %v1527_v12 = vpop.f32.mrb[27].mxu0 }
 0x31b   : > { %v1051_v41 = vpop.f32.mrb[24].mxu1 }
 0x31c   : > { %v1532_v14 = vpop.f32.mrb[25].mxu1  ;;  %1556 = vmatprep.mubr.msk.bf16.mxu1 %vm206_vm1, %v1150_v11 }
 0x31d   : > { %v1054_v16 = vpop.f32.mrb[26].mxu1 }
 0x31e   : > { %v1151_v17 = vpack.c.bf16 %v1054_v16, %v1051_v41  ;;  %v1533_v47 = vpop.f32.mrb[27].mxu1 }
 0x31f   : > { %v1095_v20 = vpop.f32.mrb[28].mxu0 }
 0x320   : > { %v1538_v3 = vpop.f32.mrb[29].mxu0  ;;  %1557 = vmatmul.mubr.msk.bf16.vlgmr.msra.gmra.mrb[32].mxu1 %vm206_vm1, %v1151_v17 }
 0x321   : > { %v1098_v24 = vpop.f32.mrb[30].mxu0 }
 0x322   : > { %v1152_v9 = vpack.c.bf16 %v1098_v24, %v1095_v20  ;;  %v1539_v26 = vpop.f32.mrb[31].mxu0 }
 0x323   : > { %v1139_v28 = vpop.f32.mrb[28].mxu1 }
 0x324   : > { %v1544_v51 = vpop.f32.mrb[29].mxu1  ;;  %1560 = vmatprep.mubr.msk.bf16.mxu1 %vm206_vm1, %v1152_v9 }
 0x325   : > { %v1142_v21 = vpop.f32.mrb[30].mxu1 }
 0x326   : > { %v1153_v57 = vpack.c.bf16 %v1142_v21, %v1139_v28  ;;  %v1545_v32 = vpop.f32.mrb[31].mxu1 }
 0x328   : > { %1561 = vmatmul.mubr.msk.bf16.gmra.mrb[36].mxu1 %vm206_vm1, %v1153_v57 }
 0x3e3   : > { %v1550_v33 = vpop.f32.mrb[32].mxu0 }
 0x3e4   : > { %v1281_v7 = vmax.f32 %v1550_v33, 0.0  ;;  %v1216_v38 = vpop.f32.mrb[33].mxu0 }
 0x3e5   : > { %v1279_v39 = vmax.f32 %v1216_v38, 0.0  ;;  %v1551_v15 = vpop.f32.mrb[34].mxu0 }
 0x3e6   : > { %1298 = vst.msk [vmem:[%s2010_s27 + $0x10] sm:$0xff] %vm1295_vm4, %v1281_v7  ;;  %v1282_v22 = vmax.f32 %v1551_v15, 0.0  ;;  %v1219_v27 = vpop.f32.mrb[35].mxu0 }
 0x3e7   : > { %1296 = vst.msk [vmem:[%s2010_s27] sm:$0xff] %vm1295_vm4, %v1279_v39  ;;  %v1280_v42 = vmax.f32 %v1219_v27, 0.0 }
 0x3e8   : > { %1299 = vst.msk [vmem:[%s2010_s27 + $0x18] sm:$0xff] %vm1295_vm4, %v1282_v22 }
 0x3e9   : > { %1297 = vst.msk [vmem:[%s2010_s27 + $0x8] sm:$0xff] %vm1295_vm4, %v1280_v42 }
 0x3eb   : > { %v1554_v61 = vpop.f32.mrb[36].mxu0 }
 0x3ec   : > { %v1285_v43 = vmax.f32 %v1554_v61, 0.0  ;;  %v1232_v45 = vpop.f32.mrb[37].mxu0 }
 0x3ed   : > { %v1283_v46 = vmax.f32 %v1232_v45, 0.0  ;;  %v1555_v23 = vpop.f32.mrb[38].mxu0 }
 0x3ee   : > { %1302 = vst.msk [vmem:[%s2010_s27 + $0x30] sm:$0xff] %vm1295_vm4, %v1285_v43  ;;  %v1286_v4 = vmax.f32 %v1555_v23, 0.0  ;;  %v1235_v29 = vpop.f32.mrb[39].mxu0 }
 0x3ef   : > { %1300 = vst.msk [vmem:[%s2010_s27 + $0x20] sm:$0xff] %vm1295_vm4, %v1283_v46  ;;  %v1284_v48 = vmax.f32 %v1235_v29, 0.0 }
 0x3f0   : > { %1303 = vst.msk [vmem:[%s2010_s27 + $0x38] sm:$0xff] %vm1295_vm4, %v1286_v4 }
 0x3f1   : > { %1301 = vst.msk [vmem:[%s2010_s27 + $0x28] sm:$0xff] %vm1295_vm4, %v1284_v48 }
 0x3f3   : > { %v1558_v54 = vpop.f32.mrb[32].mxu1 }
 0x3f4   : > { %v1289_v62 = vmax.f32 %v1558_v54, 0.0  ;;  %v1248_v63 = vpop.f32.mrb[33].mxu1 }
 0x3f5   : > { %v1287_v49 = vmax.f32 %v1248_v63, 0.0  ;;  %v1559_v31 = vpop.f32.mrb[34].mxu1 }
 0x3f6   : > { %1306 = vst.msk [vmem:[%s2010_s27 + $0x50] sm:$0xff] %vm1295_vm4, %v1289_v62  ;;  %v1290_v1 = vmax.f32 %v1559_v31, 0.0  ;;  %v1251_v60 = vpop.f32.mrb[35].mxu1 }
 0x3f7   : > { %1304 = vst.msk [vmem:[%s2010_s27 + $0x40] sm:$0xff] %vm1295_vm4, %v1287_v49  ;;  %v1288_v44 = vmax.f32 %v1251_v60, 0.0 }
 0x3f8   : > { %1307 = vst.msk [vmem:[%s2010_s27 + $0x58] sm:$0xff] %vm1295_vm4, %v1290_v1 }
 0x3f9   : > { %1305 = vst.msk [vmem:[%s2010_s27 + $0x48] sm:$0xff] %vm1295_vm4, %v1288_v44 }
 0x3fb   : > { %v1562_v0 = vpop.f32.mrb[36].mxu1 }
 0x3fc   : > { %v1293_v30 = vmax.f32 %v1562_v0, 0.0  ;;  %v1264_v18 = vpop.f32.mrb[37].mxu1 }
 0x3fd   : > { %v1291_v52 = vmax.f32 %v1264_v18, 0.0  ;;  %v1563_v53 = vpop.f32.mrb[38].mxu1 }
 0x3fe   : > { %1310 = vst.msk [vmem:[%s2010_s27 + $0x70] sm:$0xff] %vm1295_vm4, %v1293_v30  ;;  %v1294_v55 = vmax.f32 %v1563_v53, 0.0  ;;  %v1267_v8 = vpop.f32.mrb[39].mxu1 }
 0x3ff   : > { %1308 = vst.msk [vmem:[%s2010_s27 + $0x60] sm:$0xff] %vm1295_vm4, %v1291_v52  ;;  %v1292_v58 = vmax.f32 %v1267_v8, 0.0 }
 0x400   : > { %1311 = vst.msk [vmem:[%s2010_s27 + $0x78] sm:$0xff] %vm1295_vm4, %v1294_v55 }
 0x401   : > { %1309 = vst.msk [vmem:[%s2010_s27 + $0x68] sm:$0xff] %vm1295_vm4, %v1292_v58 }
 0x402 PF: > { %s13_s12 = sadd.s32 1, %s1648_s12  }
 0x403   : > { %p10_p4 = scmp.ge.s32.totalorder %s13_s12, 4  }
 0x405   :  { %12 = sbr.rel (!%p10_p4) target bundleno = 1 (0x1), region = 62 }

</bundles_post_ra>
